<compile_context>
chip_gen: v7x
topology: tpu7x:2x2x1
jax: 0.10.0
libtpu: 0.0.40
codegen_flags: <defaults>
</compile_context>

<pallas_src>
import functools

import jax
import jax.numpy as jnp
from jax.experimental import pallas as pl
from jax.experimental.pallas import tpu as pltpu


def _bce_duie_kernel(logits_ref, labels_ref, mask_ref, num_ref, den_ref,
                     *, n_tok, n_cls):
    """One grid step = one (tb, n_tok * n_cls) slab of flattened rows.

    Each row holds all n_tok * n_cls logits of one sequence chunk, lane-dense.
    Per row we emit:
        num[r] = (1/C) * sum_t mask[r, t] * sum_c bce(x, y)[r, t*C + c]
        den[r] = sum_t mask[r, t]
    The per-example combine (sum over chunks), the division and the batch
    mean are a few-hundred-element XLA epilogue.
    """
    x = logits_ref[...]                      # (tb, n_tok * n_cls), native dtype
    y = labels_ref[...].astype(x.dtype)      # bf16 stays bf16 (VPU/EUP density)
    m = mask_ref[...].astype(jnp.float32)    # (tb, n_tok)

    # Numerically-stable BCE-with-logits (reduction='none'), elementwise in the
    # input dtype; only the reductions below are widened to f32.
    #   bce = max(x, 0) - x*y + log1p(exp(-|x|))
    bce = jnp.maximum(x, 0) - x * y + jnp.log1p(jnp.exp(-jnp.abs(x)))

    # Masked per-row sum.  Tokens are contiguous groups of n_cls lanes, so the
    # per-token class sums are static contiguous lane-slices of `bce` -- no
    # reshape / relayout of the big array and no MXU needed.  The wrapper's
    # sequence-split choice keeps n_tok small (<= 32), so this unrolled loop
    # stays compact.
    tb = x.shape[0]
    acc = jnp.zeros((tb, 1), jnp.float32)
    for t in range(n_tok):
        tok = bce[:, t * n_cls:(t + 1) * n_cls].astype(jnp.float32)  # (tb, C)
        acc = acc + m[:, t:t + 1] * jnp.sum(tok, axis=1, keepdims=True)

    num_ref[...] = (acc * (1.0 / n_cls))[None, :, :]                 # (1, tb, 1)
    den_ref[...] = jnp.sum(m, axis=1, keepdims=True)[None, :, :]     # (1, tb, 1)


def _choose_seq_split(B, S, C, *, target_rows=32, max_chunk_tokens=32):
    """Pick G | S: each example is split into G sequence chunks, giving
    rows = B*G independent rows of length (S // G) * C.

    Goals: (a) row length is a multiple of 128 (lane-dense vregs),
           (b) rows >= target_rows so the grid has several steps
               (pipeline depth + v7x dual-TensorCore sharding),
           (c) tokens-per-chunk small, so the in-kernel unrolled per-token
               reduction stays compact.
    Falls back to G = 1 (still correct) if no divisor is lane-aligned.
    """
    best = 1
    for g in range(1, S + 1):
        if S % g:
            continue
        sc = S // g
        if (sc * C) % 128 != 0:
            continue
        best = g
        if B * g >= target_rows and sc <= max_chunk_tokens:
            break
    return best


def _choose_row_tile(rows, row_bytes, *, target_bytes=2 << 20):
    """Rows per grid step.

    ~2 MiB of input per tile keeps each DMA well above the ~0.35 us fixed
    grid-step overhead, while the true working set
    (2 inputs x 2 pipeline buffers x tile + ~2 tile-sized f32 temporaries for
    the BCE, i.e. roughly 6-7x one tile for f32 inputs) stays far under the
    32 MiB vmem_limit_bytes requested below -- including v5e (16 MiB default
    would also fit) and v7x (64 MiB physical).  On v7x, raising target_bytes
    to ~4 MiB amortizes the step overhead a little further and still fits.

    tb is a multiple of 8 (sublane rule) or covers all rows; when there are
    enough rows it is capped so the grid keeps >= 4 steps.
    """
    if rows <= 8:
        return rows                               # single block, grid=(1,)
    tb = max(1, target_bytes // max(1, row_bytes))
    if rows >= 32:
        tb = min(tb, rows // 4)                   # >= 4 grid steps
    else:
        tb = min(tb, rows // 2)                   # >= 2 grid steps
    tb = max(8, (tb // 8) * 8)
    return rows if tb >= rows else tb


def bce_loss_for_duie(logits, labels, mask, *, target_tile_bytes=2 << 20):
    """JAX/Pallas equivalent of BCELossForDuIE.forward; returns a scalar."""
    B, S, C = logits.shape
    mask2d = jnp.reshape(mask, (B, S))

    G = _choose_seq_split(B, S, C)
    Sc = S // G                 # tokens per row (chunk)
    L = Sc * C                  # row length = lane dimension
    rows = B * G

    # Free, row-major-contiguous reshapes (no HBM copy, no padding).
    x = jnp.reshape(logits, (rows, L))
    y = jnp.reshape(labels, (rows, L))
    m = jnp.reshape(mask2d, (rows, Sc))

    tb = _choose_row_tile(rows, L * logits.dtype.itemsize,
                          target_bytes=target_tile_bytes)
    # Ragged last block is fine: Pallas pads the reads; the garbage rows land
    # in output rows >= `rows` and are sliced off below, BEFORE the division,
    # so they can never contribute NaN/Inf.
    nb = (rows + tb - 1) // tb

    kernel = functools.partial(_bce_duie_kernel, n_tok=Sc, n_cls=C)

    # Outputs are per-row scalars (nb*tb f32 each).  They keep the natural
    # (tb, 1) column layout of the row reductions; forcing a lane-dense row
    # here would only relayout a few-KiB store.
    num, den = pl.pallas_call(
        kernel,
        out_shape=(
            jax.ShapeDtypeStruct((nb, tb, 1), jnp.float32),
            jax.ShapeDtypeStruct((nb, tb, 1), jnp.float32),
        ),
        grid_spec=pltpu.PrefetchScalarGridSpec(
            num_scalar_prefetch=0,
            grid=(nb,),
            in_specs=[
                pl.BlockSpec((tb, L), lambda i: (i, 0)),
                pl.BlockSpec((tb, L), lambda i: (i, 0)),
                pl.BlockSpec((tb, Sc), lambda i: (i, 0)),
            ],
            out_specs=(
                pl.BlockSpec((1, tb, 1), lambda i: (i, 0, 0)),
                pl.BlockSpec((1, tb, 1), lambda i: (i, 0, 0)),
            ),
        ),
        compiler_params=pltpu.CompilerParams(
            # Per-block-independent outputs -> batch-tile axis can shard
            # across both TensorCores on v7x; neutral on v5e/v6e.
            dimension_semantics=("parallel",),
            vmem_limit_bytes=32 << 20,
        ),
    )(x, y, m)

    # Drop ragged-block garbage rows, then re-combine the G sequence chunks of
    # each example (the masked loss is linear over tokens).
    num = jnp.reshape(num, (nb * tb,))[:rows].reshape(B, G).sum(axis=1)  # (B,)
    den = jnp.reshape(den, (nb * tb,))[:rows].reshape(B, G).sum(axis=1)  # (B,)

    # den == 0 (fully-masked example) yields NaN, matching the PyTorch module.
    return jnp.mean(num / den)


def _reference(logits, labels, mask):
    x = logits.astype(jnp.float32)
    y = labels.astype(jnp.float32)
    m = mask.astype(jnp.float32)
    bce = jnp.maximum(x, 0.0) - x * y + jnp.log1p(jnp.exp(-jnp.abs(x)))
    loss = bce * m[:, :, None]
    loss = jnp.sum(jnp.mean(loss, axis=2), axis=1) / jnp.sum(m, axis=1)
    return jnp.mean(loss)


if __name__ == "__main__":
    # Small shapes consistent with the module: (batch=2, seq=8, num_classes=32)
    B, S, C = 2, 8, 32
    key = jax.random.PRNGKey(0)
    k1, k2, k3 = jax.random.split(key, 3)

    logits = jax.random.normal(k1, (B, S, C), dtype=jnp.float32)
    labels = jax.random.bernoulli(k2, 0.3, (B, S, C)).astype(jnp.float32)
    # Token-level mask: first few tokens valid per example (nonzero row sums).
    valid_len = jnp.array([6, 8], dtype=jnp.int32)
    mask = (jnp.arange(S)[None, :] < valid_len[:, None]).astype(jnp.float32)

    loss = bce_loss_for_duie(logits, labels, mask)
    jax.block_until_ready(loss)

    ref = _reference(logits, labels, mask)
    assert jnp.allclose(loss, ref, rtol=1e-4, atol=1e-5), (loss, ref)

    print("KERNEL_OK")
</pallas_src>

<mosaic_0001>
module attributes {stable_mosaic.version = 11 : i64} {
  func.func @_bce_duie_kernel(%arg0: i32, %arg1: memref<4x128xf32, #tpu.memory_space<vmem>>, %arg2: memref<4x128xf32, #tpu.memory_space<vmem>>, %arg3: memref<4x4xf32, #tpu.memory_space<vmem>>, %arg4: memref<1x4x1xf32, #tpu.memory_space<vmem>>, %arg5: memref<1x4x1xf32, #tpu.memory_space<vmem>>) attributes {dimension_semantics = [#tpu.dimension_semantics<parallel>], iteration_bounds = array<i64: 1>, scalar_prefetch = 0 : i64, scratch_operands = 0 : i64, tpu.core_type = #tpu.core_type<tc>, window_params = [{transform_indices = @transform_0, window_bounds = array<i64: 4, 128>}, {transform_indices = @transform_1, window_bounds = array<i64: 4, 128>}, {transform_indices = @transform_2, window_bounds = array<i64: 4, 4>}, {transform_indices = @transform_3, window_bounds = array<i64: 1, 4, 1>}, {transform_indices = @transform_4, window_bounds = array<i64: 1, 4, 1>}]} {
    %c0 = arith.constant 0 : index
    %c0_0 = arith.constant 0 : index
    %0 = vector.load %arg1[%c0, %c0_0] : memref<4x128xf32, #tpu.memory_space<vmem>>, vector<4x128xf32>
    %c0_1 = arith.constant 0 : index
    %c0_2 = arith.constant 0 : index
    %1 = vector.load %arg2[%c0_1, %c0_2] : memref<4x128xf32, #tpu.memory_space<vmem>>, vector<4x128xf32>
    %c0_3 = arith.constant 0 : index
    %c0_4 = arith.constant 0 : index
    %2 = vector.load %arg3[%c0_3, %c0_4] : memref<4x4xf32, #tpu.memory_space<vmem>>, vector<4x4xf32>
    %cst = arith.constant 0.000000e+00 : f32
    %3 = vector.broadcast %cst : f32 to vector<4x128xf32>
    %4 = arith.maximumf %0, %3 : vector<4x128xf32>
    %5 = arith.mulf %0, %1 : vector<4x128xf32>
    %6 = arith.subf %4, %5 : vector<4x128xf32>
    %7 = math.absf %0 : vector<4x128xf32>
    %cst_5 = arith.constant 0.000000e+00 : f32
    %8 = vector.broadcast %cst_5 : f32 to vector<4x128xf32>
    %9 = arith.subf %8, %7 : vector<4x128xf32>
    %10 = math.exp %9 : vector<4x128xf32>
    %11 = math.log1p %10 : vector<4x128xf32>
    %12 = arith.addf %6, %11 : vector<4x128xf32>
    %cst_6 = arith.constant 0.000000e+00 : f32
    %13 = vector.broadcast %cst_6 : f32 to vector<4x1xf32>
    %14 = vector.extract_strided_slice %12 {offsets = [0, 0], sizes = [4, 32], strides = [1, 1]} : vector<4x128xf32> to vector<4x32xf32>
    %15 = vector.extract_strided_slice %2 {offsets = [0, 0], sizes = [4, 1], strides = [1, 1]} : vector<4x4xf32> to vector<4x1xf32>
    %cst_7 = arith.constant dense<0.000000e+00> : vector<4xf32>
    %16 = vector.multi_reduction <add>, %14, %cst_7 [1] : vector<4x32xf32> to vector<4xf32>
    %17 = vector.shape_cast %16 : vector<4xf32> to vector<4x1xf32>
    %18 = arith.mulf %15, %17 : vector<4x1xf32>
    %19 = arith.addf %13, %18 : vector<4x1xf32>
    %20 = vector.extract_strided_slice %12 {offsets = [0, 32], sizes = [4, 32], strides = [1, 1]} : vector<4x128xf32> to vector<4x32xf32>
    %21 = vector.extract_strided_slice %2 {offsets = [0, 1], sizes = [4, 1], strides = [1, 1]} : vector<4x4xf32> to vector<4x1xf32>
    %cst_8 = arith.constant dense<0.000000e+00> : vector<4xf32>
    %22 = vector.multi_reduction <add>, %20, %cst_8 [1] : vector<4x32xf32> to vector<4xf32>
    %23 = vector.shape_cast %22 : vector<4xf32> to vector<4x1xf32>
    %24 = arith.mulf %21, %23 : vector<4x1xf32>
    %25 = arith.addf %19, %24 : vector<4x1xf32>
    %26 = vector.extract_strided_slice %12 {offsets = [0, 64], sizes = [4, 32], strides = [1, 1]} : vector<4x128xf32> to vector<4x32xf32>
    %27 = vector.extract_strided_slice %2 {offsets = [0, 2], sizes = [4, 1], strides = [1, 1]} : vector<4x4xf32> to vector<4x1xf32>
    %cst_9 = arith.constant dense<0.000000e+00> : vector<4xf32>
    %28 = vector.multi_reduction <add>, %26, %cst_9 [1] : vector<4x32xf32> to vector<4xf32>
    %29 = vector.shape_cast %28 : vector<4xf32> to vector<4x1xf32>
    %30 = arith.mulf %27, %29 : vector<4x1xf32>
    %31 = arith.addf %25, %30 : vector<4x1xf32>
    %32 = vector.extract_strided_slice %12 {offsets = [0, 96], sizes = [4, 32], strides = [1, 1]} : vector<4x128xf32> to vector<4x32xf32>
    %33 = vector.extract_strided_slice %2 {offsets = [0, 3], sizes = [4, 1], strides = [1, 1]} : vector<4x4xf32> to vector<4x1xf32>
    %cst_10 = arith.constant dense<0.000000e+00> : vector<4xf32>
    %34 = vector.multi_reduction <add>, %32, %cst_10 [1] : vector<4x32xf32> to vector<4xf32>
    %35 = vector.shape_cast %34 : vector<4xf32> to vector<4x1xf32>
    %36 = arith.mulf %33, %35 : vector<4x1xf32>
    %37 = arith.addf %31, %36 : vector<4x1xf32>
    %cst_11 = arith.constant 3.125000e-02 : f32
    %38 = vector.broadcast %cst_11 : f32 to vector<4x1xf32>
    %39 = arith.mulf %37, %38 : vector<4x1xf32>
    %40 = vector.shape_cast %39 : vector<4x1xf32> to vector<1x4x1xf32>
    %c0_12 = arith.constant 0 : index
    %c0_13 = arith.constant 0 : index
    %c0_14 = arith.constant 0 : index
    %41 = vector.load %arg4[%c0_12, %c0_13, %c0_14] : memref<1x4x1xf32, #tpu.memory_space<vmem>>, vector<1x4x1xf32>
    tpu.vector_store %arg4[%c0_12, %c0_13, %c0_14], %40 {strides = array<i32>} : memref<1x4x1xf32, #tpu.memory_space<vmem>>, vector<1x4x1xf32>,
    %cst_15 = arith.constant dense<0.000000e+00> : vector<4xf32>
    %42 = vector.multi_reduction <add>, %2, %cst_15 [1] : vector<4x4xf32> to vector<4xf32>
    %43 = vector.shape_cast %42 : vector<4xf32> to vector<4x1xf32>
    %44 = vector.shape_cast %43 : vector<4x1xf32> to vector<1x4x1xf32>
    %c0_16 = arith.constant 0 : index
    %c0_17 = arith.constant 0 : index
    %c0_18 = arith.constant 0 : index
    %45 = vector.load %arg5[%c0_16, %c0_17, %c0_18] : memref<1x4x1xf32, #tpu.memory_space<vmem>>, vector<1x4x1xf32>
    tpu.vector_store %arg5[%c0_16, %c0_17, %c0_18], %44 {strides = array<i32>} : memref<1x4x1xf32, #tpu.memory_space<vmem>>, vector<1x4x1xf32>,
    return
  }
  func.func @transform_0(%arg0: i32) -> (i32, i32) {
    %c0_i32 = arith.constant 0 : i32
    %c0_i32_0 = arith.constant 0 : i32
    return %arg0, %c0_i32 : i32, i32
  }
  func.func @transform_1(%arg0: i32) -> (i32, i32) {
    %c0_i32 = arith.constant 0 : i32
    %c0_i32_0 = arith.constant 0 : i32
    return %arg0, %c0_i32 : i32, i32
  }
  func.func @transform_2(%arg0: i32) -> (i32, i32) {
    %c0_i32 = arith.constant 0 : i32
    %c0_i32_0 = arith.constant 0 : i32
    return %arg0, %c0_i32 : i32, i32
  }
  func.func @transform_3(%arg0: i32) -> (i32, i32, i32) {
    %c0_i32 = arith.constant 0 : i32
    %c0_i32_0 = arith.constant 0 : i32
    %c0_i32_1 = arith.constant 0 : i32
    return %arg0, %c0_i32, %c0_i32_0 : i32, i32, i32
  }
  func.func @transform_4(%arg0: i32) -> (i32, i32, i32) {
    %c0_i32 = arith.constant 0 : i32
    %c0_i32_0 = arith.constant 0 : i32
    %c0_i32_1 = arith.constant 0 : i32
    return %arg0, %c0_i32, %c0_i32_0 : i32, i32, i32
  }
}

</mosaic_0001>

<bundles_post_ra>
// kernel: tpu_custom_call.1
= control target key start
LH: loop header
LB: loop body
LE: loop exit
PB: predicated region body
PF: predicated region fallthrough
CT: control target
= control target key end

     0   :  { %10 = vsyncpa [#allocation3], 0  ;;  %s247_s0 = inlined_call_operand.hbm [shape: f32[4,128], index: 0, kind: input, shape index: {}]   ;;  %s248_s1 = inlined_call_operand.hbm [shape: f32[4,128], index: 1, kind: input, shape index: {}]   ;;  %s249_s2 = inlined_call_operand.vmem [shape: f32[4,4], index: 2, kind: input, shape index: {}]   ;;  %s250_s3 = inlined_call_operand.vmem [shape: f32[1,4,1], index: 3, kind: output, shape index: {0}]   ;;  %s251_s4 = inlined_call_operand.vmem [shape: f32[1,4,1], index: 4, kind: output, shape index: {1}]  }
   0x1   :  { %11 = vsyncpa [#allocation5], 0  ;;  %s181_s15 = smov [#allocation2]   ;;  %s182_s17 = smov [#allocation4]  }
   0x2   :  { %s18_s16 = sshll.u32 %s181_s15, 4  ;;  %s28_s18 = sshll.u32 %s182_s17, 4  ;;  %s19_s16 = int_to_ptr.vmem [resolvable:$true] %s18_s16  ;;  %s29_s18 = int_to_ptr.vmem [resolvable:$true] %s28_s18 }
   0x3   :  { %s133_s21 = scalar_lea.hbm %s247_s0, 64 }
   0x4   :  { %p134_p0 = scmp.ne.s32.totalorder %s247_s0, %s133_s21  ;;  %p137_p1 = scmp.lt.u32.totalorder %s133_s21, %s247_s0 }
   0x6   :  { %p139_p2 = pnand %p137_p1, %p134_p0 }
   0x8   :  { %142 = shalt.err (!%p139_p2)
}
   0x9   :  { %s143_s26 = scalar_lea.vmem %s19_s16, 64  ;;  %p148_p4 = scmp.lt.s32.totalorder %s19_s16, %s19_s16 }
   0xa   :  { %p144_p3 = scmp.ne.s32.totalorder %s19_s16, %s143_s26  ;;  %p149_p5 = scmp.lt.s32.totalorder %s143_s26, %s143_s26 }
   0xc   :  { %p150_p6 = por %p149_p5, %p148_p4 }
   0xe   :  { %p151_p7 = pnand %p150_p6, %p144_p3 }
  0x10   :  { %154 = shalt.err (!%p151_p7)
}
  0x11   :  { %21 = dma.hbm_to_vmem [thread:$0]  %s247_s0, 64, %s19_s16, [#allocation3]  }
  0x12   :  { %s155_s5 = scalar_lea.hbm %s248_s1, 64 }
  0x13   :  { %p156_p8 = scmp.ne.s32.totalorder %s248_s1, %s155_s5  ;;  %p159_p9 = scmp.lt.u32.totalorder %s155_s5, %s248_s1 }
  0x15   :  { %p161_p10 = pnand %p159_p9, %p156_p8 }
  0x17   :  { %164 = shalt.err (!%p161_p10)
}
  0x18   :  { %s165_s10 = scalar_lea.vmem %s29_s18, 64  ;;  %p170_p12 = scmp.lt.s32.totalorder %s29_s18, %s29_s18 }
  0x19   :  { %p166_p11 = scmp.ne.s32.totalorder %s29_s18, %s165_s10  ;;  %p171_p13 = scmp.lt.s32.totalorder %s165_s10, %s165_s10 }
  0x1b   :  { %p172_p0 = por %p171_p13, %p170_p12 }
  0x1d   :  { %p173_p1 = pnand %p172_p0, %p166_p11 }
  0x1f   :  { %176 = shalt.err (!%p173_p1)
}
  0x20   :  { %31 = dma.hbm_to_vmem [thread:$0]  %s248_s1, 64, %s29_s18, [#allocation5]  }
  0x21   :  { %177 = dma.done.wait [#allocation3], 64  }
  0x22   :  { %178 = vsyncadd [#allocation3], 4294967232 }
  0x23   :  { %179 = dma.done.wait [#allocation5], 64  }
  0x24   :  { %180 = vsyncadd [#allocation5], 4294967232  ;;  %v40_v0 = vld [vmem:[#allocation2] sm:$0xf]  ;;  %v41_v7 = vld [vmem:[#allocation4] sm:$0xf] }
  0x25   :  { %v46_v1 = vand.u32 2147483647, %v40_v0  ;;  %v43_v9 = vmax.f32 %v40_v0, 0.0  ;;  %v44_v10 = vmul.f32 %v41_v7, %v40_v0  ;;  %s183_s1 = smov 96   ;;  %s184_s12 = smov 32   ;;  %vm60_vm1 = vcmask 257024  }
  0x26   :  { %s185_s13 = smov 64   ;;  %v42_v25 = vld [vmem:[%s249_s2] sm:$0xf]  ;;  %s186_s16 = smov 127   ;;  %vm106_vm2 = vcmask 27648   ;;  %vm104_vm3 = vcmask 3072  }
  0x27   :  { %v47_v2 = vsub.f32 0.0, %v46_v1  ;;  %v45_v14 = vsub.f32 %v43_v9, %v44_v10  ;;  %s187_s17 = smov 126   ;;  %s188_s18 = smov 125   ;;  %v107_v32 = vsel %vm106_vm2, %v42_v25, 0.0 }
  0x29   :  { %v48_v3 = vmul.f32 1.442695, %v47_v2 }
  0x2b   :  { %129 = vpow2.f32 %v48_v3 }
  0x35   :  { %v130_v4 = vpop.eup %129 }
  0x36   :  { %v50_v5 = vadd.f32 1.0, %v130_v4  ;;  %v53_v6 = vmul.f32 -0.5, %v130_v4  ;;  %v56_v11 = vand.u32 2147483647, %v130_v4 }
  0x38   :  { %131 = vlog2.f32 %v50_v5  ;;  %v54_v8 = vadd.f32 1.0, %v53_v6  ;;  %vm57_vm0 = vcmp.lt.f32.partialorder %v56_v11, 0.0004427343 }
  0x3a   :  { %v55_v12 = vmul.f32 %v130_v4, %v54_v8 }
  0x42   :  { %v132_v13 = vpop.eup %131 }
  0x43   :  { %v52_v15 = vmul.f32 0.6931472, %v132_v13 }
  0x45   :  { %v58_v16 = vsel %vm57_vm0, %v55_v12, %v52_v15 }
  0x46   :  { %v59_v17 = vadd.f32 %v58_v16, %v45_v14 }
  0x48   :  { %67 = vrot.lane.b32.xlu0 %v59_v17, %s183_s1  ;;  %91 = vrot.lane.b32.xlu1 %v59_v17, %s184_s12  ;;  %v61_v20 = vsel %vm60_vm1, %v59_v17, 0.0 }
  0x4c   :  { %79 = vrot.lane.b32.xlu0 %v59_v17, %s185_s13 }
  0xba   :  { %v68_v18 = vpop.permute.xlu0 %67  ;;  %v92_v22 = vpop.permute.xlu1 %91 }
  0xbb   :  { %v70_v19 = vsel %vm60_vm1, %v68_v18, 0.0  ;;  %v94_v24 = vsel %vm60_vm1, %v92_v22, 0.0 }
  0xbc   :  { %71 = vadd.xlane.f32.xlu1 %v70_v19 }
  0xbe   :  { %v80_v21 = vpop.permute.xlu0 %79 }
  0xbf   :  { %v82_v23 = vsel %vm60_vm1, %v80_v21, 0.0 }
  0xc0   :  { %83 = vadd.xlane.f32.xlu0 %v82_v23  ;;  %62 = vadd.xlane.f32.xlu1 %v61_v20 }
  0xc4   :  { %95 = vadd.xlane.f32.xlu0 %v94_v24 }
 0x149   :  { %v72_v26 = vpop.xlane.xlu1 %71 }
 0x14a   :  { %v73_v27 = vmul.f32 %v72_v26, %v42_v25 }
 0x14c   :  { %75 = vrot.lane.b32.xlu0 %v73_v27, %s186_s16 }
 0x14d   :  { %v84_v28 = vpop.xlane.xlu0 %83  ;;  %v63_v33 = vpop.xlane.xlu1 %62 }
 0x14e   :  { %v85_v29 = vmul.f32 %v84_v28, %v42_v25  ;;  %v64_v34 = vmul.f32 %v63_v33, %v42_v25 }
 0x150   :  { %87 = vrot.lane.b32.xlu1 %v85_v29, %s187_s17 }
 0x151   :  { %v96_v30 = vpop.xlane.xlu0 %95 }
 0x152   :  { %v97_v31 = vmul.f32 %v96_v30, %v42_v25 }
 0x154   :  { %99 = vrot.lane.b32.xlu1 %v97_v31, %s188_s18 }
 0x16b   :  { %108 = vadd.xlane.f32.xlu0 %v107_v32 }
 0x1be   :  { %v76_v35 = vpop.permute.xlu0 %75 }
 0x1bf   :  { %v78_v37 = vadd.f32 %v76_v35, %v64_v34 }
 0x1c2   :  { %v88_v36 = vpop.permute.xlu1 %87 }
 0x1c3   :  { %v90_v38 = vadd.f32 %v88_v36, %v78_v37 }
 0x1c6   :  { %v100_v39 = vpop.permute.xlu1 %99 }
 0x1c7   :  { %v102_v40 = vadd.f32 %v100_v39, %v90_v38 }
 0x1c9   :  { %v103_v41 = vmul.f32 0.03125, %v102_v40 }
 0x1cb   :  { %105 = vst.msk [vmem:[%s250_s3] sm:$0xf] %vm104_vm3, %v103_v41 }
 0x1f8   :  { %v109_v42 = vpop.xlane.xlu0 %108 }
 0x1f9   :  { %110 = vst.msk [vmem:[%s251_s4] sm:$0xf] %vm104_vm3, %v109_v42 }
 0x1fa   :  { %119 = vsyncpa [#allocation3], 1 }
 0x1fb   :  { %120 = vsyncpa [#allocation5], 1 }

</bundles_post_ra>
